<compile_context>
chip_gen: v7x
topology: tpu7x:2x2x1
jax: 0.10.0
libtpu: 0.0.40
codegen_flags: <defaults>
</compile_context>

<pallas_src>
import jax
import jax.numpy as jnp
from jax.experimental import pallas as pl
from jax.experimental.pallas import tpu as pltpu

_LANE = 128     # lane width (last-dim vreg grain)
_SUBLANE = 8    # f32 sublane grain


def _round_up(x, m):
    return ((x + m - 1) // m) * m


def _feature_encoder_kernel(x_ref, mask_ref, wt_ref, b_ref, y_ref):
    # x_ref:    (tile_n, F)       bf16  node-feature tile
    # mask_ref: (tile_n, F)       bf16  learnable mask tile (pre-sigmoid)
    # wt_ref:   (C_pad8, F)       f32   classifier weight^T (zero-padded, resident)
    # b_ref:    (C_pad8, 1)       f32   classifier bias     (zero-padded, resident)
    # y_ref:    (C_pad8, tile_n)  f32   transposed logits (class dim on sublanes)
    x = x_ref[...].astype(jnp.float32)
    m = mask_ref[...].astype(jnp.float32)
    # with torch.no_grad(): x = x * self.mask.sigmoid()
    gated = x * jax.nn.sigmoid(m)                             # (tile_n, F) f32
    # logits^T = W^T @ gated^T : contract the feature axis of both operands.
    logits_t = jax.lax.dot_general(
        wt_ref[...], gated,
        dimension_numbers=(((1,), (1,)), ((), ())),
        preferred_element_type=jnp.float32)                   # (C_pad8, tile_n)
    y_ref[...] = logits_t + b_ref[...]


def _choose_tile_n(n, f, c_pad8, vmem_budget=16 * 1024 * 1024):
    """Pick (tile_n, num_tiles).  Inputs stream as bf16, output as f32^T."""
    # double-buffered bytes per node: 2 inputs x 2 bufs x F bf16  +  2 bufs x C_pad8 f32
    per_row = 2 * 2 * f * 2 + 2 * c_pad8 * 4
    cap = (vmem_budget // max(per_row, 1)) // _LANE * _LANE
    cap = max(_LANE, min(2048, cap))
    if n <= _LANE:
        return n, 1                       # single full-array block: no padding at all
    # >= 2 lane-dense row tiles so both v7x TensorCores get work (neutral on v5e/v6e).
    tile = min(cap, _round_up(pl.cdiv(n, 2), _LANE))
    return tile, pl.cdiv(n, tile)


def feature_encoder_forward(x, mask, w, b, edge_index=None):
    """Pallas wrapper. `edge_index` accepted for API parity but unused."""
    # TODO(synk): edge_index-driven message passing / GNNExplainer loop is an
    # external iterative module and is not reproducible here.
    del edge_index
    N, F = x.shape
    C = w.shape[1]
    C_pad8 = _round_up(C, _SUBLANE)

    # Stream the two large arrays as bf16 (in a real pipeline these would already
    # be bf16 or the cast fuses with their producer); compute stays f32 in-kernel.
    x_bf = x.astype(jnp.bfloat16)
    m_bf = mask.astype(jnp.bfloat16)

    # Tiny classifier head, VMEM-resident: transposed + zero-padded to 8 sublanes.
    wt = jnp.zeros((C_pad8, F), jnp.float32).at[:C, :].set(w.astype(jnp.float32).T)
    bp = jnp.zeros((C_pad8, 1), jnp.float32).at[:C, 0].set(
        b.reshape(C).astype(jnp.float32))

    tile_n, num_tiles = _choose_tile_n(N, F, C_pad8)
    n_out = num_tiles * tile_n            # output stores always in-bounds

    # Explicit VMEM budget (double-buffered tiles + resident head) with headroom;
    # keeps us honest against v7x's 64 MiB physical VMEM if F / C grow.
    tile_bytes = (2 * 2 * tile_n * F * 2          # x + mask tiles, 2 buffers, bf16
                  + 2 * C_pad8 * tile_n * 4       # output tile, 2 buffers, f32
                  + 2 * C_pad8 * (F + 1) * 4)     # resident W^T + bias
    vmem_limit = int(min(max(2 * tile_bytes, 4 * 1024 * 1024), 64 * 1024 * 1024))

    out_t = pl.pallas_call(
        _feature_encoder_kernel,
        out_shape=jax.ShapeDtypeStruct((C_pad8, n_out), jnp.float32),
        grid=(num_tiles,),
        in_specs=[
            pl.BlockSpec((tile_n, F), lambda i: (i, 0)),       # x tile
            pl.BlockSpec((tile_n, F), lambda i: (i, 0)),       # mask tile
            pl.BlockSpec((C_pad8, F), lambda i: (0, 0)),       # W^T (resident)
            pl.BlockSpec((C_pad8, 1), lambda i: (0, 0)),       # bias (resident)
        ],
        out_specs=pl.BlockSpec((C_pad8, tile_n), lambda i: (0, i)),
        compiler_params=pltpu.CompilerParams(
            dimension_semantics=("parallel",),                 # shard row tiles on v7x
            vmem_limit_bytes=vmem_limit,
        ),
    )(x_bf, m_bf, wt, bp)

    # (C_pad8, n_out) -> (N, C): drop sublane/lane padding, transpose the tiny head.
    return out_t[:C, :N].T


if __name__ == "__main__":
    key = jax.random.PRNGKey(0)
    k_x, k_mask, k_w, k_b, k_e = jax.random.split(key, 5)

    # Small shapes consistent with a node-classification graph:
    N = 16            # number of nodes (data.x.shape[0])
    F = 32            # feature dim     (data.x.shape[1])
    C = 4             # data.num_classes
    E = 8             # number of edges (unused by the kernel)

    x = jax.random.normal(k_x, (N, F), dtype=jnp.float32)
    # self.mask = nn.Parameter(torch.rand(data.x.shape) * 0.1)
    mask = jax.random.uniform(k_mask, (N, F), dtype=jnp.float32) * 0.1
    # deterministic synthetic classifier parameters
    w = jax.random.normal(k_w, (F, C), dtype=jnp.float32) * 0.1
    b = jax.random.normal(k_b, (C,), dtype=jnp.float32) * 0.01
    edge_index = jax.random.randint(k_e, (2, E), 0, N, dtype=jnp.int32)

    y_expl = feature_encoder_forward(x, mask, w, b, edge_index)
    y_expl = jax.block_until_ready(y_expl)

    # reference check in plain JAX (f32); small slack for the bf16 input stream
    ref = (x * jax.nn.sigmoid(mask)) @ w + b
    assert y_expl.shape == (N, C)
    assert jnp.allclose(y_expl, ref, atol=2e-2, rtol=2e-2), \
        float(jnp.max(jnp.abs(y_expl - ref)))

    print("KERNEL_OK")
</pallas_src>

<mosaic_0001>
module attributes {stable_mosaic.version = 11 : i64} {
  func.func @_feature_encoder_kernel(%arg0: i32, %arg1: memref<16x32xbf16, #tpu.memory_space<vmem>>, %arg2: memref<16x32xbf16, #tpu.memory_space<vmem>>, %arg3: memref<8x32xf32, #tpu.memory_space<vmem>>, %arg4: memref<8x1xf32, #tpu.memory_space<vmem>>, %arg5: memref<8x16xf32, #tpu.memory_space<vmem>>) attributes {dimension_semantics = [#tpu.dimension_semantics<parallel>], iteration_bounds = array<i64: 1>, scalar_prefetch = 0 : i64, scratch_operands = 0 : i64, tpu.core_type = #tpu.core_type<tc>, window_params = [{transform_indices = @transform_0, window_bounds = array<i64: 16, 32>}, {transform_indices = @transform_1, window_bounds = array<i64: 16, 32>}, {pipeline_mode = #tpu.pipeline_mode<synchronous>, transform_indices = @transform_2, window_bounds = array<i64: 8, 32>}, {pipeline_mode = #tpu.pipeline_mode<synchronous>, transform_indices = @transform_3, window_bounds = array<i64: 8, 1>}, {transform_indices = @transform_4, window_bounds = array<i64: 8, 16>}]} {
    %c0 = arith.constant 0 : index
    %c0_0 = arith.constant 0 : index
    %0 = vector.load %arg1[%c0, %c0_0] : memref<16x32xbf16, #tpu.memory_space<vmem>>, vector<16x32xbf16>
    %1 = arith.extf %0 : vector<16x32xbf16> to vector<16x32xf32>
    %c0_1 = arith.constant 0 : index
    %c0_2 = arith.constant 0 : index
    %2 = vector.load %arg2[%c0_1, %c0_2] : memref<16x32xbf16, #tpu.memory_space<vmem>>, vector<16x32xbf16>
    %3 = arith.extf %2 : vector<16x32xbf16> to vector<16x32xf32>
    %4 = arith.negf %3 : vector<16x32xf32>
    %5 = math.exp %4 : vector<16x32xf32>
    %cst = arith.constant 1.000000e+00 : f32
    %6 = vector.broadcast %cst : f32 to vector<16x32xf32>
    %7 = arith.addf %6, %5 : vector<16x32xf32>
    %8 = arith.divf %6, %7 : vector<16x32xf32>
    %9 = arith.mulf %1, %8 : vector<16x32xf32>
    %c0_3 = arith.constant 0 : index
    %c0_4 = arith.constant 0 : index
    %10 = vector.load %arg3[%c0_3, %c0_4] : memref<8x32xf32, #tpu.memory_space<vmem>>, vector<8x32xf32>
    %cst_5 = arith.constant dense<0.000000e+00> : vector<8x16xf32>
    %11 = tpu.matmul %10, %9, %cst_5 {dimension_numbers = #tpu.dot_dimension_numbers<[1], [1], [0], [0], [0, 0, 1, 0], [], []>} : vector<8x32xf32>, vector<16x32xf32>, vector<8x16xf32> -> vector<8x16xf32>
    %c0_6 = arith.constant 0 : index
    %c0_7 = arith.constant 0 : index
    %12 = vector.load %arg4[%c0_6, %c0_7] : memref<8x1xf32, #tpu.memory_space<vmem>>, vector<8x1xf32>
    %13 = vector.broadcast %12 : vector<8x1xf32> to vector<8x16xf32>
    %14 = arith.addf %11, %13 : vector<8x16xf32>
    %c0_8 = arith.constant 0 : index
    %c0_9 = arith.constant 0 : index
    %15 = vector.load %arg5[%c0_8, %c0_9] : memref<8x16xf32, #tpu.memory_space<vmem>>, vector<8x16xf32>
    tpu.vector_store %arg5[%c0_8, %c0_9], %14 {strides = array<i32>} : memref<8x16xf32, #tpu.memory_space<vmem>>, vector<8x16xf32>,
    return
  }
  func.func @transform_0(%arg0: i32) -> (i32, i32) {
    %c0_i32 = arith.constant 0 : i32
    %c0_i32_0 = arith.constant 0 : i32
    return %arg0, %c0_i32 : i32, i32
  }
  func.func @transform_1(%arg0: i32) -> (i32, i32) {
    %c0_i32 = arith.constant 0 : i32
    %c0_i32_0 = arith.constant 0 : i32
    return %arg0, %c0_i32 : i32, i32
  }
  func.func @transform_2(%arg0: i32) -> (i32, i32) {
    %c0_i32 = arith.constant 0 : i32
    %c0_i32_0 = arith.constant 0 : i32
    %c0_i32_1 = arith.constant 0 : i32
    return %c0_i32, %c0_i32_0 : i32, i32
  }
  func.func @transform_3(%arg0: i32) -> (i32, i32) {
    %c0_i32 = arith.constant 0 : i32
    %c0_i32_0 = arith.constant 0 : i32
    %c0_i32_1 = arith.constant 0 : i32
    return %c0_i32, %c0_i32_0 : i32, i32
  }
  func.func @transform_4(%arg0: i32) -> (i32, i32) {
    %c0_i32 = arith.constant 0 : i32
    %c0_i32_0 = arith.constant 0 : i32
    return %c0_i32, %arg0 : i32, i32
  }
}

</mosaic_0001>

<bundles_post_ra>
// kernel: tpu_custom_call.1
= control target key start
LH: loop header
LB: loop body
LE: loop exit
PB: predicated region body
PF: predicated region fallthrough
CT: control target
= control target key end

     0   :  { %9 = vsyncpa [#allocation3], 0  ;;  %s316_s0 = inlined_call_operand.vmem [shape: bf16[16,32], index: 0, kind: input, shape index: {}]   ;;  %s317_s1 = inlined_call_operand.hbm [shape: bf16[16,32], index: 1, kind: input, shape index: {}]   ;;  %s318_s2 = inlined_call_operand.vmem [shape: f32[8,32], index: 2, kind: input, shape index: {}]   ;;  %s319_s3 = inlined_call_operand.vmem [shape: f32[8,1], index: 3, kind: input, shape index: {}]   ;;  %s320_s4 = inlined_call_operand.hbm [shape: f32[8,16], index: 4, kind: output, shape index: {}]  }
   0x1   :  { %10 = vsyncpa [#allocation4], 0  ;;  %s250_s15 = smov [#allocation2]   ;;  %s202_s19 = scalar_lea.hbm %s317_s1, 128 }
   0x2   :  { %s18_s16 = sshll.u32 %s250_s15, 4  ;;  %p203_p0 = scmp.ne.s32.totalorder %s317_s1, %s202_s19  ;;  %s19_s16 = int_to_ptr.vmem [resolvable:$true] %s18_s16 }
   0x3   :  { %p206_p1 = scmp.lt.u32.totalorder %s202_s19, %s317_s1 }
   0x5   :  { %p208_p2 = pnand %p206_p1, %p203_p0 }
   0x7   :  { %211 = shalt.err (!%p208_p2)
}
   0x8   :  { %s212_s24 = scalar_lea.vmem %s19_s16, 128  ;;  %p217_p4 = scmp.lt.s32.totalorder %s19_s16, %s19_s16 }
   0x9   :  { %p213_p3 = scmp.ne.s32.totalorder %s19_s16, %s212_s24  ;;  %p218_p5 = scmp.lt.s32.totalorder %s212_s24, %s212_s24 }
   0xb   :  { %p219_p6 = por %p218_p5, %p217_p4 }
   0xd   :  { %p220_p7 = pnand %p219_p6, %p213_p3 }
   0xf   :  { %223 = shalt.err (!%p220_p7)
}
  0x10   :  { %s251_s25 = smov 64   ;;  %s252_s26 = smov 4  }
  0x11   :  { %24 = dma.hbm_to_vmem [thread:$0]  %s317_s1, 128, %s19_s16, [#allocation3], %s251_s25, %s251_s25, %s252_s26  }
  0x12   :  { %246 = dma.done.wait [#allocation3], 128  }
  0x13   :  { %247 = vsyncadd [#allocation3], 4294967168  ;;  %v253_v0 = vmov 0.0|0.0   ;;  %vm254_vm0 = vmmov 0   ;;  %v255_v1 = vmov 0.0   ;;  %v256_v2 = vmov 0  }
  0x14   :  { %181 = vmatprep.subr.bf16.mxu0 %v253_v0  ;;  %178 = vmatprep.mubr.msk.f32.mxu0 %vm254_vm0, %v255_v1  ;;  %v168_v3 = vld [vmem:[#allocation2] sm:$0xff]   ;;  %vm61_vm1 = vcmask 261120   ;;  %s257_s7 = smov [#allocation5]   ;;  %vm141_vm3 = vcmask 130048  }
  0x15   :  { %193 = vset.pattern.permute.xlu0 %v256_v2  ;;  %v169_v4 = vunpack.c.l.bf16 %v168_v3  ;;  %v170_v5 = vunpack.c.h.bf16 %v168_v3  ;;  %v55_v6 = vld [vmem:[%s319_s3] sm:$0xff]  ;;  %vm183_vm2 = vmpackc.low %vm61_vm1, %vm61_vm1  ;;  %s149_s8 = sshll.u32 %s257_s7, 4  ;;  %s150_s8 = int_to_ptr.vmem [resolvable:$true] %s149_s8 }
  0x16   :  { %58 = vperm.xlu0 %193, %v55_v6   ;;  %v164_v13 = vld [vmem:[%s316_s0] sm:$0xff]   ;;  %s224_s0 = scalar_lea.vmem %s150_s8, 128  ;;  %p229_p9 = scmp.lt.s32.totalorder %s150_s8, %s150_s8 }
  0x17   :  { %v158_v7 = vmul.f32 -1.442695, %v169_v4  ;;  %v159_v8 = vmul.f32 -1.442695, %v170_v5  ;;  %v165_v14 = vunpack.c.l.bf16 %v164_v13  ;;  %v166_v15 = vunpack.c.h.bf16 %v164_v13  ;;  %v54_v21 = vld [vmem:[%s318_s2] sm:$0xff]  ;;  %p225_p8 = scmp.ne.s32.totalorder %s150_s8, %s224_s0  ;;  %p230_p10 = scmp.lt.s32.totalorder %s224_s0, %s224_s0 }
  0x19   :  { %194 = vpow2.f32 %v158_v7  ;;  %p231_p11 = por %p230_p10, %p229_p9 }
  0x1a   :  { %196 = vpow2.f32 %v159_v8 }
  0x1b   :  { %p232_p12 = pnand %p231_p11, %p225_p8 }
  0x23   :  { %v195_v9 = vpop.eup %194 }
  0x24   :  { %v197_v10 = vpop.eup %196  ;;  %v46_v11 = vadd.f32 1.0, %v195_v9 }
  0x25   :  { %v47_v12 = vadd.f32 1.0, %v197_v10 }
  0x26   :  { %198 = vrcp.f32 %v46_v11 }
  0x27   :  { %200 = vrcp.f32 %v47_v12 }
  0x30   :  { %v199_v16 = vpop.eup %198 }
  0x31   :  { %v201_v17 = vpop.eup %200  ;;  %v52_v18 = vmul.f32 %v199_v16, %v165_v14 }
  0x32   :  { %v53_v19 = vmul.f32 %v201_v17, %v166_v15 }
  0x34   :  { %v182_v20 = vpack.c.bf16 %v53_v19, %v52_v18 }
  0x36   :  { %184 = vmatpush3.bf16.xpose.msk.msra.mxu0 %vm183_vm2, %v182_v20 }
  0x3d   :  { %179 = vmatmul.mubr.msk.f32.vlgmr.msra.gmra.mrb[0].mxu0 %vm61_vm1, %v54_v21 }
  0x95   :  { %v59_v22 = vpop.permute.xlu0 %58 }
 0x110   :  { %v137_v23 = vpop.f32.mrb[0].mxu0 }
 0x111   :  { %v138_v24 = vadd.f32 %v137_v23, %v59_v22  ;;  %v180_v25 = vpop.f32.mrb[1].mxu0 }
 0x113   :  { %142 = vst.msk [vmem:[#allocation5] sm:$0xff] %vm141_vm3, %v138_v24 }
 0x114   :  { %235 = shalt.err (!%p232_p12)
}
 0x115   :  { %s236_s2 = scalar_lea.hbm %s320_s4, 128 }
 0x116   :  { %p237_p13 = scmp.ne.s32.totalorder %s320_s4, %s236_s2  ;;  %p240_p0 = scmp.lt.u32.totalorder %s236_s2, %s320_s4 }
 0x118   :  { %p242_p1 = pnand %p240_p0, %p237_p13 }
 0x11a   :  { %245 = shalt.err (!%p242_p1)
}
 0x11b   :  { %152 = dma.vmem_to_hbm [thread:$0]  %s150_s8, 128, %s320_s4, [#allocation4]  }
 0x11c   :  { %248 = dma.done.wait [#allocation4], 128  }
 0x11d   :  { %249 = vsyncadd [#allocation4], 4294967168 }
 0x11e   :  { %156 = vsyncpa [#allocation3], 1 }
 0x11f   :  { %157 = vsyncpa [#allocation4], 1 }

</bundles_post_ra>
